<compile_context>
chip_gen: v6e
topology: v6e:2x2x1
jax: 0.10.0
libtpu: 0.0.40
codegen_flags: <defaults>
</compile_context>

<pallas_src>
import jax
import jax.numpy as jnp
from jax import lax
from jax.experimental import pallas as pl
from jax.experimental.pallas import tpu as pltpu

_LANES = 128
_SUBLANES = 8


def _round_up(x, m):
    return ((x + m - 1) // m) * m


def _cdiv(a, b):
    return (a + b - 1) // b


def _make_sim_loss_kernel(*, tile_n, tile_m, n_rows, n_cols,
                          x2_resident, mask_rows, mask_cols):
    """grid = (N_tiles, M_tiles); axis 0 parallel, axis 1 reduction.

    out_ref: (tile_n, 128) f32 block; its block index is constant across the
    reduction axis, so it stays VMEM-resident and acts as the accumulator.
    """
    n_lane_blocks = tile_m // _LANES

    def kernel(x1_ref, x2_ref, sim_ref, out_ref):
        i = pl.program_id(0)
        j = pl.program_id(1)

        @pl.when(j == 0)
        def _():
            out_ref[...] = jnp.zeros_like(out_ref)

        if x2_resident:
            start = pl.multiple_of(j * tile_m, _LANES)
            x2 = x2_ref[pl.ds(start, tile_m), :]
        else:
            x2 = x2_ref[...]

        # MXU matmul: contract the embedding dims directly (no transpose),
        # accumulate in f32.  Rows are pre-normalized, so dot == cosine sim.
        dot = lax.dot_general(
            x1_ref[...], x2,
            dimension_numbers=(((1,), (1,)), ((), ())),
            preferred_element_type=jnp.float32)            # (tile_n, tile_m)

        if mask_rows:
            row_ok = (lax.broadcasted_iota(jnp.int32, (tile_n, _LANES), 0)
                      + i * tile_n) < n_rows
        if mask_cols:
            col_base = (lax.broadcasted_iota(jnp.int32, (tile_n, _LANES), 1)
                        + j * tile_m)

        # Fold (sim - dot)^2 into the resident accumulator lane-block by
        # lane-block: no full (tile_n, tile_m) squared-diff temporary and a
        # short (tile_m/128-deep) dependency chain per step.
        acc = out_ref[...]
        for c in range(n_lane_blocks):
            sl = slice(c * _LANES, (c + 1) * _LANES)
            diff = sim_ref[:, sl].astype(jnp.float32) - dot[:, sl]
            if mask_cols:
                ok = (col_base + c * _LANES) < n_cols
                if mask_rows:
                    ok = ok & row_ok
                diff = jnp.where(ok, diff, 0.0)
            elif mask_rows:
                diff = jnp.where(row_ok, diff, 0.0)
            acc = acc + diff * diff
        out_ref[...] = acc

    return kernel


def sim_matrix_embedding_loss(input1, input2, sim_matrix, *,
                              tile_n=512, tile_m=512,
                              stream_dtype=None,
                              vmem_budget_bytes=28 * 1024 * 1024):
    """loss = sum((sim_matrix - cosine_sim(input1, input2)) ** 2)."""
    N, D = input1.shape
    M, D2 = input2.shape
    assert D == D2, "embedding dims must match"
    assert sim_matrix.shape == (N, M)

    # f32 streaming keeps parity with the f32 reference; pass jnp.bfloat16 to
    # halve x1/x2 HBM + VMEM traffic when a ~1e-2 cosine tolerance is OK.
    stream_dtype = jnp.dtype(jnp.float32 if stream_dtype is None else stream_dtype)
    sim_itemsize = jnp.dtype(sim_matrix.dtype).itemsize

    D_pad = _round_up(D, _LANES)
    # TODO(synk): for very large D (>= ~4K f32) add a third 'arbitrary' grid
    # axis over D with an f32 dot accumulator instead of one (tile, D_pad) block.

    # Exact row-norm reciprocals, hoisted once and folded into the rows.
    x1f = input1.astype(jnp.float32)
    x2f = input2.astype(jnp.float32)
    inv_u = 1.0 / jnp.sqrt(jnp.sum(x1f * x1f, axis=1, keepdims=True))   # (N, 1)
    inv_v = 1.0 / jnp.sqrt(jnp.sum(x2f * x2f, axis=1, keepdims=True))   # (M, 1)
    x1n = (x1f * inv_u).astype(stream_dtype)
    x2n = (x2f * inv_v).astype(stream_dtype)

    # Tile selection: clamp for small problems, keep (8, 128) alignment,
    # shrink to a conservative VMEM budget.
    tile_n = max(_SUBLANES, min(tile_n, _round_up(N, _SUBLANES)))
    tile_m = max(_LANES, min(tile_m, _round_up(M, _LANES)))

    def vmem_estimate(tn, tm, x2_rows):
        return (2 * tn * D_pad * stream_dtype.itemsize          # x1 (double-buffered)
                + 2 * x2_rows * D_pad * stream_dtype.itemsize   # x2
                + 2 * tn * tm * sim_itemsize                    # sim tile
                + 2 * tn * _LANES * 4                           # out block
                + 2 * tn * tm * 4                               # dot + elementwise temps
                + (1 << 20))                                    # slack

    while vmem_estimate(tile_n, tile_m, tile_m) > vmem_budget_bytes and tile_m > _LANES:
        tile_m = max(_LANES, _round_up(tile_m // 2, _LANES))
    while vmem_estimate(tile_n, tile_m, tile_m) > vmem_budget_bytes and tile_n > _SUBLANES:
        tile_n = max(_SUBLANES, _round_up(tile_n // 2, _SUBLANES))

    n_tiles = _cdiv(N, tile_n)
    m_tiles = _cdiv(M, tile_m)

    # Megacore (v7x): make sure the 'parallel' axis has >= 2 tiles to feed
    # both TensorCores when there is real work along the reduction axis.
    if n_tiles == 1 and m_tiles >= 2 and N > _SUBLANES:
        tile_n = _round_up(_cdiv(N, 2), _SUBLANES)
        n_tiles = _cdiv(N, tile_n)

    N_rows = n_tiles * tile_n
    M_rows = m_tiles * tile_m

    # x1/x2 are tiny vs sim (O((N+M)D)); pad them with zero rows so the dot is
    # exactly 0 on any overhang.  sim itself is streamed unpadded.
    x1p = jnp.pad(x1n, ((0, N_rows - N), (0, D_pad - D)))
    x2p = jnp.pad(x2n, ((0, M_rows - M), (0, D_pad - D)))

    # Keep x2 VMEM-resident for the whole call (single DMA) when small enough.
    x2_resident = (n_tiles > 1 and m_tiles > 1
                   and M_rows * D_pad * stream_dtype.itemsize <= (4 << 20)
                   and vmem_estimate(tile_n, tile_m, M_rows) <= vmem_budget_bytes)
    if x2_resident:
        x2_spec = pl.BlockSpec((M_rows, D_pad), lambda i, j: (0, 0))
    else:
        x2_spec = pl.BlockSpec((tile_m, D_pad), lambda i, j: (j, 0))

    kernel = _make_sim_loss_kernel(
        tile_n=tile_n, tile_m=tile_m, n_rows=N, n_cols=M,
        x2_resident=x2_resident,
        mask_rows=(N % tile_n != 0), mask_cols=(M % tile_m != 0))

    cost = pl.CostEstimate(
        flops=int(2 * N * M * D + 3 * N * M),
        transcendentals=0,
        bytes_accessed=int(N * M * sim_itemsize
                           + (N_rows + M_rows) * D_pad * stream_dtype.itemsize
                           + N_rows * _LANES * 4))

    partials = pl.pallas_call(
        kernel,
        out_shape=jax.ShapeDtypeStruct((N_rows, _LANES), jnp.float32),
        grid_spec=pltpu.PrefetchScalarGridSpec(
            num_scalar_prefetch=0,
            grid=(n_tiles, m_tiles),
            in_specs=[
                pl.BlockSpec((tile_n, D_pad), lambda i, j: (i, 0)),   # input1 rows
                x2_spec,                                              # input2 rows
                pl.BlockSpec((tile_n, tile_m), lambda i, j: (i, j)),  # sim tile (unpadded)
            ],
            out_specs=pl.BlockSpec((tile_n, _LANES), lambda i, j: (i, 0)),
        ),
        compiler_params=pltpu.CompilerParams(
            dimension_semantics=("parallel", "arbitrary"),
            vmem_limit_bytes=48 * 1024 * 1024),
        cost_estimate=cost,
    )(x1p, x2p, sim_matrix)

    # Single cheap cross-lane reduction of the lane-dense partial sums.
    return jnp.sum(partials)


def _ref_loss(a, b, s):
    dot = a @ b.T
    un = jnp.linalg.norm(a, axis=1, keepdims=True)
    vn = jnp.linalg.norm(b, axis=1, keepdims=True)
    return jnp.sum((s - dot / un / vn.T) ** 2)


if __name__ == "__main__":
    key = jax.random.PRNGKey(0)
    k1, k2, k3 = jax.random.split(key, 3)

    # Small shapes implied by the forward: N users, M words, D embedding dim.
    N, M, D = 16, 16, 32
    input1 = jax.random.normal(k1, (N, D), dtype=jnp.float32)
    input2 = jax.random.normal(k2, (M, D), dtype=jnp.float32)
    sim_matrix = jax.random.uniform(k3, (N, M), dtype=jnp.float32)

    loss = jax.block_until_ready(
        sim_matrix_embedding_loss(input1, input2, sim_matrix))
    ref = _ref_loss(input1, input2, sim_matrix)
    assert jnp.allclose(loss, ref, rtol=1e-3, atol=1e-3), (loss, ref)

    # Exercises the ragged-edge (in-kernel masked, no sim pad) path.
    N2, M2, D2 = 300, 300, 72
    a = jax.random.normal(k1, (N2, D2), dtype=jnp.float32)
    b = jax.random.normal(k2, (M2, D2), dtype=jnp.float32)
    s = jax.random.uniform(k3, (N2, M2), dtype=jnp.float32)
    loss2 = jax.block_until_ready(sim_matrix_embedding_loss(a, b, s))
    ref2 = _ref_loss(a, b, s)
    assert jnp.allclose(loss2, ref2, rtol=1e-3, atol=1e-2), (loss2, ref2)

    # Exercises the multi-tile grid, j-axis accumulation and VMEM-resident x2.
    N3, M3, D3 = 1024, 1536, 64
    a3 = jax.random.normal(k1, (N3, D3), dtype=jnp.float32)
    b3 = jax.random.normal(k2, (M3, D3), dtype=jnp.float32)
    s3 = jax.random.uniform(k3, (N3, M3), dtype=jnp.float32)
    loss3 = jax.block_until_ready(sim_matrix_embedding_loss(a3, b3, s3))
    ref3 = _ref_loss(a3, b3, s3)
    assert jnp.allclose(loss3, ref3, rtol=2e-3, atol=1e-1), (loss3, ref3)

    print("KERNEL_OK")
</pallas_src>

<mosaic_0001>
module attributes {stable_mosaic.version = 11 : i64} {
  func.func @kernel(%arg0: i32, %arg1: i32, %arg2: memref<16x128xf32, #tpu.memory_space<vmem>>, %arg3: memref<128x128xf32, #tpu.memory_space<vmem>>, %arg4: memref<16x128xf32, #tpu.memory_space<vmem>>, %arg5: memref<16x128xf32, #tpu.memory_space<vmem>>) attributes {dimension_semantics = [#tpu.dimension_semantics<parallel>, #tpu.dimension_semantics<arbitrary>], iteration_bounds = array<i64: 1, 1>, scalar_prefetch = 0 : i64, scratch_operands = 0 : i64, tpu.core_type = #tpu.core_type<tc>, window_params = [{transform_indices = @transform_0, window_bounds = array<i64: 16, 128>}, {transform_indices = @transform_1, window_bounds = array<i64: 128, 128>}, {transform_indices = @transform_2, window_bounds = array<i64: 16, 128>}, {transform_indices = @transform_3, window_bounds = array<i64: 16, 128>}]} {
    %c0_i32 = arith.constant 0 : i32
    %0 = arith.cmpi eq, %arg1, %c0_i32 : i32
    %1 = arith.extui %0 : i1 to i32
    %c0_i32_0 = arith.constant 0 : i32
    %2 = arith.cmpi ne, %1, %c0_i32_0 : i32
    scf.if %2 {
      %cst_12 = arith.constant 0.000000e+00 : f32
      %22 = vector.broadcast %cst_12 : f32 to vector<16x128xf32>
      %c0_13 = arith.constant 0 : index
      %c0_14 = arith.constant 0 : index
      %23 = vector.load %arg5[%c0_13, %c0_14] : memref<16x128xf32, #tpu.memory_space<vmem>>, vector<16x128xf32>
      tpu.vector_store %arg5[%c0_13, %c0_14], %22 {strides = array<i32>} : memref<16x128xf32, #tpu.memory_space<vmem>>, vector<16x128xf32>,
    } else {
    }
    %c0 = arith.constant 0 : index
    %c0_1 = arith.constant 0 : index
    %3 = vector.load %arg3[%c0, %c0_1] : memref<128x128xf32, #tpu.memory_space<vmem>>, vector<128x128xf32>
    %c0_2 = arith.constant 0 : index
    %c0_3 = arith.constant 0 : index
    %4 = vector.load %arg2[%c0_2, %c0_3] : memref<16x128xf32, #tpu.memory_space<vmem>>, vector<16x128xf32>
    %cst = arith.constant dense<0.000000e+00> : vector<16x128xf32>
    %5 = tpu.matmul %4, %3, %cst {dimension_numbers = #tpu.dot_dimension_numbers<[1], [1], [0], [0], [0, 0, 1, 0], [], []>} : vector<16x128xf32>, vector<128x128xf32>, vector<16x128xf32> -> vector<16x128xf32>
    %6 = tpu.iota {dimensions = array<i32: 1>} : vector<16x128xi32>
    %c128_i32 = arith.constant 128 : i32
    %7 = arith.muli %arg1, %c128_i32 : i32
    %8 = vector.broadcast %7 : i32 to vector<16x128xi32>
    %9 = arith.addi %6, %8 : vector<16x128xi32>
    %c0_4 = arith.constant 0 : index
    %c0_5 = arith.constant 0 : index
    %10 = vector.load %arg5[%c0_4, %c0_5] : memref<16x128xf32, #tpu.memory_space<vmem>>, vector<16x128xf32>
    %c0_6 = arith.constant 0 : index
    %c0_7 = arith.constant 0 : index
    %11 = vector.load %arg4[%c0_6, %c0_7] : memref<16x128xf32, #tpu.memory_space<vmem>>, vector<16x128xf32>
    %12 = arith.subf %11, %5 : vector<16x128xf32>
    %c0_i32_8 = arith.constant 0 : i32
    %13 = vector.broadcast %c0_i32_8 : i32 to vector<16x128xi32>
    %14 = arith.addi %9, %13 : vector<16x128xi32>
    %c16_i32 = arith.constant 16 : i32
    %15 = vector.broadcast %c16_i32 : i32 to vector<16x128xi32>
    %16 = arith.cmpi slt, %14, %15 : vector<16x128xi32>
    %cst_9 = arith.constant 0.000000e+00 : f32
    %17 = vector.broadcast %cst_9 : f32 to vector<16x128xf32>
    %18 = arith.select %16, %12, %17 : vector<16x128xi1>, vector<16x128xf32>
    %19 = arith.mulf %18, %18 : vector<16x128xf32>
    %20 = arith.addf %10, %19 : vector<16x128xf32>
    %c0_10 = arith.constant 0 : index
    %c0_11 = arith.constant 0 : index
    %21 = vector.load %arg5[%c0_10, %c0_11] : memref<16x128xf32, #tpu.memory_space<vmem>>, vector<16x128xf32>
    tpu.vector_store %arg5[%c0_10, %c0_11], %20 {strides = array<i32>} : memref<16x128xf32, #tpu.memory_space<vmem>>, vector<16x128xf32>,
    return
  }
  func.func @transform_0(%arg0: i32, %arg1: i32) -> (i32, i32) {
    %c0_i32 = arith.constant 0 : i32
    %c0_i32_0 = arith.constant 0 : i32
    return %arg0, %c0_i32 : i32, i32
  }
  func.func @transform_1(%arg0: i32, %arg1: i32) -> (i32, i32) {
    %c0_i32 = arith.constant 0 : i32
    %c0_i32_0 = arith.constant 0 : i32
    return %arg1, %c0_i32 : i32, i32
  }
  func.func @transform_2(%arg0: i32, %arg1: i32) -> (i32, i32) {
    %c0_i32 = arith.constant 0 : i32
    return %arg0, %arg1 : i32, i32
  }
  func.func @transform_3(%arg0: i32, %arg1: i32) -> (i32, i32) {
    %c0_i32 = arith.constant 0 : i32
    %c0_i32_0 = arith.constant 0 : i32
    return %arg0, %c0_i32 : i32, i32
  }
}

</mosaic_0001>

<bundles_post_ra>
// kernel: tpu_custom_call.1
= control target key start
LH: loop header
LB: loop body
LE: loop exit
PB: predicated region body
PF: predicated region fallthrough
CT: control target
= control target key end

     0   :  { %8 = vsyncpa [#allocation3], 0  ;;  %s389_s0 = inlined_call_operand.hbm [shape: f32[16,128], index: 0, kind: input, shape index: {}]   ;;  %s390_s1 = inlined_call_operand.hbm [shape: f32[128,128], index: 1, kind: input, shape index: {}]   ;;  %s391_s2 = inlined_call_operand.hbm [shape: f32[16,16], index: 2, kind: input, shape index: {}]   ;;  %s392_s3 = inlined_call_operand.hbm [shape: f32[16,128], index: 3, kind: output, shape index: {}]  }
   0x1   :  { %9 = vsyncpa [#allocation6], 0 }
   0x2   :  { %10 = vsyncpa [#allocation4], 0  ;;  %s339_s12 = smov [#allocation5]   ;;  %s340_s14 = smov [#allocation2]  }
   0x3   :  { %s28_s13 = sshll.u32 %s339_s12, 4  ;;  %s16_s15 = sshll.u32 %s340_s14, 4  ;;  %s29_s13 = int_to_ptr.vmem [resolvable:$true] %s28_s13  ;;  %s17_s15 = int_to_ptr.vmem [resolvable:$true] %s16_s15 }
   0x4   :  { %s261_s16 = scalar_lea.vmem %s29_s13, 2048  ;;  %p266_p1 = scmp.lt.s32.totalorder %s29_s13, %s29_s13 }
   0x5   :  { %p262_p0 = scmp.ne.s32.totalorder %s29_s13, %s261_s16  ;;  %p267_p2 = scmp.lt.s32.totalorder %s261_s16, %s261_s16 }
   0x7   :  { %p268_p3 = por %p267_p2, %p266_p1 }
   0x9   :  { %p269_p4 = pnand %p268_p3, %p262_p0 }
   0xb   :  { %272 = shalt.err (!%p269_p4)
}
   0xc   :  { %s341_s17 = smov 128   ;;  %s342_s18 = smov 8  }
   0xd   :  { %34 = dma.hbm_to_vmem [thread:$0]  %s390_s1, 2048, %s29_s13, [#allocation6], %s341_s17, %s341_s17, %s342_s18  }
   0xe   :  { %s281_s21 = scalar_lea.vmem %s17_s15, 256  ;;  %p286_p6 = scmp.lt.s32.totalorder %s17_s15, %s17_s15 }
   0xf   :  { %p282_p5 = scmp.ne.s32.totalorder %s17_s15, %s281_s21  ;;  %p287_p7 = scmp.lt.s32.totalorder %s281_s21, %s281_s21 }
  0x11   :  { %p288_p8 = por %p287_p7, %p286_p6 }
  0x13   :  { %p289_p9 = pnand %p288_p8, %p282_p5 }
  0x15   :  { %292 = shalt.err (!%p289_p9)
}
  0x16   :  { %22 = dma.hbm_to_vmem [thread:$0]  %s389_s0, 256, %s17_s15, [#allocation3], %s341_s17, %s341_s17, %s342_s18  }
  0x17   :  { %s343_s24 = smov [#allocation7]  }
  0x18   :  { %s40_s25 = sshll.u32 %s343_s24, 4  ;;  %s41_s25 = int_to_ptr.vmem [resolvable:$true] %s40_s25 }
  0x19   :  { %s301_s26 = scalar_lea.vmem %s41_s25, 256  ;;  %p306_p11 = scmp.lt.s32.totalorder %s41_s25, %s41_s25 }
  0x1a   :  { %p302_p10 = scmp.ne.s32.totalorder %s41_s25, %s301_s26  ;;  %p307_p12 = scmp.lt.s32.totalorder %s301_s26, %s301_s26 }
  0x1c   :  { %p308_p13 = por %p307_p12, %p306_p11 }
  0x1e   :  { %p309_p0 = pnand %p308_p13, %p302_p10 }
  0x20   :  { %312 = shalt.err (!%p309_p0)
}
  0x21   :  { %46 = dma.hbm_to_vmem [thread:$0]  %s391_s2, 256, %s41_s25, [#allocation6], %s341_s17, %s341_s17, %s342_s18  }
  0x22   :  { %333 = dma.done.wait [#allocation3], 256  }
  0x23   :  { %334 = vsyncadd [#allocation3], 4294967040 }
  0x24   :  { %335 = dma.done.wait [#allocation6], 2304  }
  0x25   :  { %336 = vsyncadd [#allocation6], 4294964992  ;;  %v77_v0 = vld [vmem:[#allocation5 + $0x78] sm:$0xff]  ;;  %v76_v1 = vld [vmem:[#allocation5 + $0x70] sm:$0xff]  ;;  %v155_v18 = vlaneseq  ;;  %s344_s0 = smov [#allocation8]  }
  0x26   :  { %211 = vmatprep.subr.mxu0 %v77_v0  ;;  %v75_v2 = vld [vmem:[#allocation5 + $0x68] sm:$0xff]  ;;  %v78_v3 = vld [vmem:[#allocation2] sm:$0xff]  ;;  %v74_v4 = vld [vmem:[#allocation5 + $0x60] sm:$0xff]  ;;  %s180_s2 = sshll.u32 %s344_s0, 4  ;;  %s181_s2 = int_to_ptr.vmem [resolvable:$true] %s180_s2 }
  0x27   :  { %212 = vmatpush3.xpose.msra.mxu0 %v77_v0  ;;  %243 = vmatprep.mubr.f32.mxu0 %v78_v3  ;;  %v73_v5 = vld [vmem:[#allocation5 + $0x58] sm:$0xff]  ;;  %v72_v6 = vld [vmem:[#allocation5 + $0x50] sm:$0xff]  ;;  %v71_v7 = vld [vmem:[#allocation5 + $0x48] sm:$0xff]  ;;  %v156_v19 = vand.u32 127, %v155_v18  ;;  %s313_s28 = scalar_lea.vmem %s181_s2, 256  ;;  %p318_p2 = scmp.lt.s32.totalorder %s181_s2, %s181_s2 }
  0x28   :  { %213 = vmatprep.subr.mxu0 %v76_v1  ;;  %v70_v8 = vld [vmem:[#allocation5 + $0x40] sm:$0xff]  ;;  %v69_v9 = vld [vmem:[#allocation5 + $0x38] sm:$0xff]  ;;  %v68_v10 = vld [vmem:[#allocation5 + $0x30] sm:$0xff]  ;;  %p314_p1 = scmp.ne.s32.totalorder %s181_s2, %s313_s28  ;;  %p319_p3 = scmp.lt.s32.totalorder %s313_s28, %s313_s28 }
  0x29   :  { %v67_v11 = vld [vmem:[#allocation5 + $0x28] sm:$0xff]  ;;  %v66_v12 = vld [vmem:[#allocation5 + $0x20] sm:$0xff]  ;;  %v65_v13 = vld [vmem:[#allocation5 + $0x18] sm:$0xff]  ;;  %vm166_vm0 = vcmp.lt.s32.totalorder %v156_v19, 16 }
  0x2a   :  { %v64_v14 = vld [vmem:[#allocation5 + $0x10] sm:$0xff]  ;;  %v63_v15 = vld [vmem:[#allocation5 + $0x8] sm:$0xff]  ;;  %v62_v16 = vld [vmem:[#allocation5] sm:$0xff]  ;;  %p320_p4 = por %p319_p3, %p318_p2 }
  0x2b   :  { %214 = vmatpush3.xpose.msra.mxu0 %v76_v1  ;;  %v79_v17 = vld [vmem:[#allocation2 + $0x8] sm:$0xff]  ;;  %v163_v20 = vld [vmem:[#allocation7 + $0x8] sm:$0xff]  ;;  %v162_v22 = vld [vmem:[#allocation7] sm:$0xff] }
  0x2c   :  { %215 = vmatprep.subr.mxu0 %v75_v2  ;;  %p321_p5 = pnand %p320_p4, %p314_p1 }
  0x2f   :  { %216 = vmatpush3.xpose.msra.mxu0 %v75_v2 }
  0x30   :  { %217 = vmatprep.subr.mxu0 %v74_v4 }
  0x33   :  { %218 = vmatpush3.xpose.msra.mxu0 %v74_v4 }
  0x34   :  { %219 = vmatprep.subr.mxu0 %v73_v5 }
  0x37   :  { %220 = vmatpush3.xpose.msra.mxu0 %v73_v5 }
  0x38   :  { %221 = vmatprep.subr.mxu0 %v72_v6 }
  0x3b   :  { %222 = vmatpush3.xpose.msra.mxu0 %v72_v6 }
  0x3c   :  { %223 = vmatprep.subr.mxu0 %v71_v7 }
  0x3f   :  { %224 = vmatpush3.xpose.msra.mxu0 %v71_v7 }
  0x40   :  { %225 = vmatprep.subr.mxu0 %v70_v8 }
  0x43   :  { %226 = vmatpush3.xpose.msra.mxu0 %v70_v8 }
  0x44   :  { %227 = vmatprep.subr.mxu0 %v69_v9 }
  0x47   :  { %228 = vmatpush3.xpose.msra.mxu0 %v69_v9 }
  0x48   :  { %229 = vmatprep.subr.mxu0 %v68_v10 }
  0x4b   :  { %230 = vmatpush3.xpose.msra.mxu0 %v68_v10 }
  0x4c   :  { %231 = vmatprep.subr.mxu0 %v67_v11 }
  0x4f   :  { %232 = vmatpush3.xpose.msra.mxu0 %v67_v11 }
  0x50   :  { %233 = vmatprep.subr.mxu0 %v66_v12 }
  0x53   :  { %234 = vmatpush3.xpose.msra.mxu0 %v66_v12 }
  0x54   :  { %235 = vmatprep.subr.mxu0 %v65_v13 }
  0x57   :  { %236 = vmatpush3.xpose.msra.mxu0 %v65_v13 }
  0x58   :  { %237 = vmatprep.subr.mxu0 %v64_v14 }
  0x5b   :  { %238 = vmatpush3.xpose.msra.mxu0 %v64_v14 }
  0x5c   :  { %239 = vmatprep.subr.mxu0 %v63_v15 }
  0x5f   :  { %240 = vmatpush3.xpose.msra.mxu0 %v63_v15 }
  0x60   :  { %241 = vmatprep.subr.mxu0 %v62_v16 }
  0x63   :  { %242 = vmatpush3.xpose.msra.mxu0 %v62_v16 }
  0x66   :  { %244 = vmatmul.mubr.f32.vlgmr.msra.gmra.mxu0 %v79_v17 }
 0x126   :  { %v245_v21 = vpop.f32.mrf.mxu0 }
 0x127   :  { %v165_v23 = vsub.f32 %v163_v20, %v245_v21 }
 0x128   :  { %v146_v24 = vpop.f32.mrf.mxu0 }
 0x129   :  { %v168_v25 = vsel %vm166_vm0, %v165_v23, 0.0  ;;  %v164_v26 = vsub.f32 %v162_v22, %v146_v24 }
 0x12a   :  { %v170_v27 = vmul.f32 %v168_v25, %v168_v25 }
 0x12b   :  { %v167_v28 = vsel %vm166_vm0, %v164_v26, 0.0 }
 0x12c   :  { %v169_v29 = vmul.f32 %v167_v28, %v167_v28  ;;  %174 = vst [vmem:[#allocation8 + $0x8] sm:$0xff] %v170_v27 }
 0x12e   :  { %173 = vst [vmem:[#allocation8] sm:$0xff] %v169_v29 }
 0x12f   :  { %324 = shalt.err (!%p321_p5)
}
 0x130   :  { %186 = dma.vmem_to_hbm [thread:$0]  %s181_s2, 256, %s392_s3, [#allocation4], %s341_s17, %s341_s17, %s342_s18  }
 0x131   :  { %337 = dma.done.wait [#allocation4], 256  }
 0x132   :  { %338 = vsyncadd [#allocation4], 4294967040 }
 0x133   :  { %190 = vsyncpa [#allocation3], 1 }
 0x134   :  { %191 = vsyncpa [#allocation6], 1 }
 0x135   :  { %192 = vsyncpa [#allocation4], 1 }

</bundles_post_ra>
